<compile_context>
chip_gen: v5e
topology: v5e:2x2
jax: 0.10.0
libtpu: 0.0.40
codegen_flags: <defaults>
</compile_context>

<pallas_src>
import jax
import jax.numpy as jnp
from jax.experimental import pallas as pl
from jax.experimental.pallas import tpu as pltpu

INPUT_SIZE = 128
HIDDEN = 128
OUTPUT_SIZE = 2


def _round_up(x, m):
    return ((x + m - 1) // m) * m


def reward_net_kernel(x_ref, w1_ref, b1_ref, w2d_ref, bd_ref, o_ref):
    # x:   [TB, INPUT_SIZE]  (bf16)
    # w1:  [INPUT_SIZE, HIDDEN] (bf16)     b1:  [1, HIDDEN] (f32)
    # w2d: [1, HIDDEN] (f32, = w2[:,1]-w2[:,0])   bd: [1, 1] (f32)
    # o:   [TB, 1]  (f32, = p1 = softmax(logits)[..., 1])
    x = x_ref[...]

    # fn1 + ReLU (bf16 x bf16 -> f32 accumulate on the MXU)
    h = jnp.dot(x, w1_ref[...], preferred_element_type=jnp.float32)
    h = jnp.maximum(h + b1_ref[...], 0.0)

    # 2-class head in closed form: d = logit1 - logit0 (VALU mul + lane reduce;
    # hidden under the x-tile DMA on all generations).
    d = jnp.sum(h * w2d_ref[...], axis=-1, keepdims=True) + bd_ref[...]   # [TB, 1]

    # softmax([l0, l1])[1] == sigmoid(l1 - l0); reciprocal goes to the EUP slot.
    p1 = pl.reciprocal(1.0 + jnp.exp(-d), approx=True)                    # [TB, 1]
    o_ref[...] = p1.astype(o_ref.dtype)


def prepare_params(w1, b1, w2, b2):
    """One-time parameter prep (hoisted out of the forward hot path).

    w1: [INPUT_SIZE, HIDDEN], b1: [HIDDEN],
    w2: [HIDDEN, OUTPUT_SIZE], b2: [OUTPUT_SIZE]
    """
    w1_bf16 = jnp.asarray(w1, jnp.bfloat16)                      # streamed as bf16
    b1_row = jnp.asarray(b1, jnp.float32).reshape(1, HIDDEN)     # added in f32
    w2 = jnp.asarray(w2, jnp.float32)
    b2 = jnp.asarray(b2, jnp.float32)
    w2_diff = (w2[:, 1] - w2[:, 0]).reshape(1, HIDDEN)
    b_diff = (b2[1] - b2[0]).reshape(1, 1)
    return w1_bf16, b1_row, w2_diff, b_diff


def reward_net_forward(x, params, block_b=4096):
    """x: [..., INPUT_SIZE] -> [..., OUTPUT_SIZE] softmax probabilities (f32).

    For best HBM efficiency pass x already in bf16 (the cast below is then a
    no-op); an f32 x is converted before the kernel.
    """
    w1, b1_row, w2_diff, b_diff = params
    lead_shape = x.shape[:-1]
    x2 = x.reshape(-1, INPUT_SIZE).astype(jnp.bfloat16)
    B = x2.shape[0]

    # Batch tile: multiple of 8 sublanes, capped at block_b rows.
    # bf16 x block at TB=4096 is 1 MiB (2 MiB double-buffered) -> fits every
    # generation's scoped VMEM with room to spare; sweep block_b upward on v7x.
    TB = min(block_b, _round_up(B, 8))
    num_blocks = pl.cdiv(B, TB)

    param_bytes = INPUT_SIZE * HIDDEN * 2 + (HIDDEN + HIDDEN + 1) * 4
    cost = pl.CostEstimate(
        flops=2 * B * INPUT_SIZE * HIDDEN + 2 * B * HIDDEN,
        transcendentals=2 * B,  # exp + reciprocal per row
        bytes_accessed=B * INPUT_SIZE * 2 + B * 4 + param_bytes,
    )

    p1 = pl.pallas_call(
        reward_net_kernel,
        out_shape=jax.ShapeDtypeStruct((B, 1), jnp.float32),
        grid=(num_blocks,),
        in_specs=[
            pl.BlockSpec((TB, INPUT_SIZE), lambda i: (i, 0)),       # x: tiled over batch
            pl.BlockSpec((INPUT_SIZE, HIDDEN), lambda i: (0, 0)),   # w1: VMEM-resident
            pl.BlockSpec((1, HIDDEN), lambda i: (0, 0)),            # b1
            pl.BlockSpec((1, HIDDEN), lambda i: (0, 0)),            # w2_diff
            pl.BlockSpec((1, 1), lambda i: (0, 0)),                 # b_diff
        ],
        out_specs=pl.BlockSpec((TB, 1), lambda i: (i, 0)),
        compiler_params=pltpu.CompilerParams(
            dimension_semantics=("parallel",),       # 2-TC split of the batch grid
            vmem_limit_bytes=32 * 1024 * 1024,       # headroom for larger block_b sweeps
        ),
        cost_estimate=cost,
    )(x2, w1, b1_row, w2_diff, b_diff)

    # Trivial lane-dense finish in XLA: [p0, p1] with p0 = 1 - p1.
    out = jnp.concatenate([1.0 - p1, p1], axis=-1)
    return out.reshape(lead_shape + (OUTPUT_SIZE,))


def init_params(key):
    """Deterministic init mimicking nn.Linear (uniform +/- 1/sqrt(fan_in))."""
    k1, k2, k3, k4 = jax.random.split(key, 4)
    bound1 = 1.0 / jnp.sqrt(float(INPUT_SIZE))
    bound2 = 1.0 / jnp.sqrt(float(HIDDEN))
    w1 = jax.random.uniform(k1, (INPUT_SIZE, HIDDEN), jnp.float32, -bound1, bound1)
    b1 = jax.random.uniform(k2, (HIDDEN,), jnp.float32, -bound1, bound1)
    w2 = jax.random.uniform(k3, (HIDDEN, OUTPUT_SIZE), jnp.float32, -bound2, bound2)
    b2 = jax.random.uniform(k4, (OUTPUT_SIZE,), jnp.float32, -bound2, bound2)
    return w1, b1, w2, b2


def _reference(x, w1, b1, w2, b2):
    h = jnp.maximum(x @ w1 + b1, 0.0)
    return jax.nn.softmax(h @ w2 + b2, axis=-1)


if __name__ == "__main__":
    key = jax.random.PRNGKey(0)
    k_params, k_x1, k_x2 = jax.random.split(key, 3)

    w1, b1, w2, b2 = init_params(k_params)
    params = prepare_params(w1, b1, w2, b2)  # one-time prep, outside hot path

    # Small single-block case.
    B1 = 8
    x1 = jax.random.normal(k_x1, (B1, INPUT_SIZE), jnp.float32)
    out1 = jax.block_until_ready(reward_net_forward(x1, params))
    ref1 = _reference(x1, w1, b1, w2, b2)
    assert out1.shape == (B1, OUTPUT_SIZE)
    # bf16 streaming + approx reciprocal -> relaxed tolerance vs f32 reference.
    assert jnp.allclose(out1, ref1, atol=2e-2)
    assert jnp.allclose(jnp.sum(out1, axis=-1), 1.0, atol=1e-5)

    # Multi-tile grid + ragged batch (no jnp.pad: edge block is masked).
    B2 = 300
    x2 = jax.random.normal(k_x2, (B2, INPUT_SIZE), jnp.float32)
    out2 = jax.block_until_ready(reward_net_forward(x2, params, block_b=128))
    ref2 = _reference(x2, w1, b1, w2, b2)
    assert out2.shape == (B2, OUTPUT_SIZE)
    assert jnp.allclose(out2, ref2, atol=2e-2)
    assert jnp.allclose(jnp.sum(out2, axis=-1), 1.0, atol=1e-5)

    print("KERNEL_OK")
</pallas_src>

<mosaic_0001>
module attributes {stable_mosaic.version = 11 : i64} {
  func.func @reward_net_kernel(%arg0: i32, %arg1: memref<8x128xbf16, #tpu.memory_space<vmem>>, %arg2: memref<128x128xbf16, #tpu.memory_space<vmem>>, %arg3: memref<1x128xf32, #tpu.memory_space<vmem>>, %arg4: memref<1x128xf32, #tpu.memory_space<vmem>>, %arg5: memref<1x1xf32, #tpu.memory_space<vmem>>, %arg6: memref<8x1xf32, #tpu.memory_space<vmem>>) attributes {dimension_semantics = [#tpu.dimension_semantics<parallel>], iteration_bounds = array<i64: 1>, scalar_prefetch = 0 : i64, scratch_operands = 0 : i64, tpu.core_type = #tpu.core_type<tc>, window_params = [{transform_indices = @transform_0, window_bounds = array<i64: 8, 128>}, {pipeline_mode = #tpu.pipeline_mode<synchronous>, transform_indices = @transform_1, window_bounds = array<i64: 128, 128>}, {pipeline_mode = #tpu.pipeline_mode<synchronous>, transform_indices = @transform_2, window_bounds = array<i64: 1, 128>}, {pipeline_mode = #tpu.pipeline_mode<synchronous>, transform_indices = @transform_3, window_bounds = array<i64: 1, 128>}, {pipeline_mode = #tpu.pipeline_mode<synchronous>, transform_indices = @transform_4, window_bounds = array<i64: 1, 1>}, {transform_indices = @transform_5, window_bounds = array<i64: 8, 1>}]} {
    %c0 = arith.constant 0 : index
    %c0_0 = arith.constant 0 : index
    %0 = vector.load %arg1[%c0, %c0_0] : memref<8x128xbf16, #tpu.memory_space<vmem>>, vector<8x128xbf16>
    %c0_1 = arith.constant 0 : index
    %c0_2 = arith.constant 0 : index
    %1 = vector.load %arg2[%c0_1, %c0_2] : memref<128x128xbf16, #tpu.memory_space<vmem>>, vector<128x128xbf16>
    %cst = arith.constant dense<0.000000e+00> : vector<8x128xf32>
    %2 = tpu.matmul %0, %1, %cst {dimension_numbers = #tpu.dot_dimension_numbers<[1], [0], [0], [1], [0, 0, 1, 1], [], []>} : vector<8x128xbf16>, vector<128x128xbf16>, vector<8x128xf32> -> vector<8x128xf32>
    %c0_3 = arith.constant 0 : index
    %c0_4 = arith.constant 0 : index
    %3 = vector.load %arg3[%c0_3, %c0_4] : memref<1x128xf32, #tpu.memory_space<vmem>>, vector<1x128xf32>
    %4 = vector.broadcast %3 : vector<1x128xf32> to vector<8x128xf32>
    %5 = arith.addf %2, %4 : vector<8x128xf32>
    %cst_5 = arith.constant 0.000000e+00 : f32
    %6 = vector.broadcast %cst_5 : f32 to vector<8x128xf32>
    %7 = arith.maximumf %5, %6 : vector<8x128xf32>
    %c0_6 = arith.constant 0 : index
    %c0_7 = arith.constant 0 : index
    %8 = vector.load %arg4[%c0_6, %c0_7] : memref<1x128xf32, #tpu.memory_space<vmem>>, vector<1x128xf32>
    %9 = vector.broadcast %8 : vector<1x128xf32> to vector<8x128xf32>
    %10 = arith.mulf %7, %9 : vector<8x128xf32>
    %cst_8 = arith.constant dense<0.000000e+00> : vector<8xf32>
    %11 = vector.multi_reduction <add>, %10, %cst_8 [1] : vector<8x128xf32> to vector<8xf32>
    %12 = vector.shape_cast %11 : vector<8xf32> to vector<8x1xf32>
    %c0_9 = arith.constant 0 : index
    %c0_10 = arith.constant 0 : index
    %13 = vector.load %arg5[%c0_9, %c0_10] : memref<1x1xf32, #tpu.memory_space<vmem>>, vector<1x1xf32>
    %14 = vector.broadcast %13 : vector<1x1xf32> to vector<8x1xf32>
    %15 = arith.addf %12, %14 : vector<8x1xf32>
    %cst_11 = arith.constant 0.000000e+00 : f32
    %16 = vector.broadcast %cst_11 : f32 to vector<8x1xf32>
    %17 = arith.subf %16, %15 : vector<8x1xf32>
    %18 = math.exp %17 : vector<8x1xf32>
    %cst_12 = arith.constant 1.000000e+00 : f32
    %19 = vector.broadcast %cst_12 : f32 to vector<8x1xf32>
    %20 = arith.addf %19, %18 : vector<8x1xf32>
    %21 = tpu.reciprocal %20 {approx = true} : vector<8x1xf32> -> vector<8x1xf32>
    %c0_13 = arith.constant 0 : index
    %c0_14 = arith.constant 0 : index
    %22 = vector.load %arg6[%c0_13, %c0_14] : memref<8x1xf32, #tpu.memory_space<vmem>>, vector<8x1xf32>
    tpu.vector_store %arg6[%c0_13, %c0_14], %21 {strides = array<i32>} : memref<8x1xf32, #tpu.memory_space<vmem>>, vector<8x1xf32>,
    return
  }
  func.func @transform_0(%arg0: i32) -> (i32, i32) {
    %c0_i32 = arith.constant 0 : i32
    %c0_i32_0 = arith.constant 0 : i32
    return %arg0, %c0_i32 : i32, i32
  }
  func.func @transform_1(%arg0: i32) -> (i32, i32) {
    %c0_i32 = arith.constant 0 : i32
    %c0_i32_0 = arith.constant 0 : i32
    %c0_i32_1 = arith.constant 0 : i32
    return %c0_i32, %c0_i32_0 : i32, i32
  }
  func.func @transform_2(%arg0: i32) -> (i32, i32) {
    %c0_i32 = arith.constant 0 : i32
    %c0_i32_0 = arith.constant 0 : i32
    %c0_i32_1 = arith.constant 0 : i32
    return %c0_i32, %c0_i32_0 : i32, i32
  }
  func.func @transform_3(%arg0: i32) -> (i32, i32) {
    %c0_i32 = arith.constant 0 : i32
    %c0_i32_0 = arith.constant 0 : i32
    %c0_i32_1 = arith.constant 0 : i32
    return %c0_i32, %c0_i32_0 : i32, i32
  }
  func.func @transform_4(%arg0: i32) -> (i32, i32) {
    %c0_i32 = arith.constant 0 : i32
    %c0_i32_0 = arith.constant 0 : i32
    %c0_i32_1 = arith.constant 0 : i32
    return %c0_i32, %c0_i32_0 : i32, i32
  }
  func.func @transform_5(%arg0: i32) -> (i32, i32) {
    %c0_i32 = arith.constant 0 : i32
    %c0_i32_0 = arith.constant 0 : i32
    return %arg0, %c0_i32 : i32, i32
  }
}

</mosaic_0001>

<bundles_post_ra>
// kernel: tpu_custom_call.1
= control target key start
LH: loop header
LB: loop body
LE: loop exit
PB: predicated region body
PF: predicated region fallthrough
CT: control target
= control target key end

     0   :  { %s315_s0 = inlined_call_operand.hbm [shape: bf16[8,128], index: 0, kind: input, shape index: {}]   ;;  %s316_s1 = inlined_call_operand.hbm [shape: bf16[128,128], index: 1, kind: input, shape index: {}]   ;;  %s317_s2 = inlined_call_operand.vmem [shape: f32[1,128], index: 2, kind: input, shape index: {}]   ;;  %s318_s3 = inlined_call_operand.vmem [shape: f32[1,128], index: 3, kind: input, shape index: {}]   ;;  %s319_s4 = inlined_call_operand.<no memory space> [shape: f32[1,1], index: 4, kind: input, shape index: {}]   ;;  %s320_s5 = inlined_call_operand.vmem [shape: f32[8,1], index: 5, kind: output, shape index: {}]  }
   0x1   :  { %v10_v0 = vstv %s319_s4 }
   0x2   :  { %11 = vst [vmem:[#allocation2] sm:$0x1] %v10_v0 }
   0x3   :  { %12 = vsyncpa [#allocation4], 0  ;;  %s19_s22 = sshll.u32 %s315_s0, 4  ;;  %s20_s22 = int_to_ptr.hbm [resolvable:$true] %s19_s22 }
   0x4   :  { %13 = vsyncpa [#allocation6], 0  ;;  %s263_s23 = smov [#allocation3]   ;;  %s29_s27 = sshll.u32 %s316_s1, 4  ;;  %s30_s27 = int_to_ptr.hbm [resolvable:$true] %s29_s27 }
   0x5   :  { %s21_s24 = sshll.u32 %s263_s23, 4  ;;  %s264_s28 = smov [#allocation5]   ;;  %s22_s24 = int_to_ptr.vmem [resolvable:$true] %s21_s24 }
   0x6   :  { %24 = dma.hbm_to_vmem [thread:$0]  %s20_s22, 64, %s22_s24, [#allocation4]  }
   0x7   :  { %s31_s29 = sshll.u32 %s264_s28, 4  ;;  %s265_s4 = smov 64   ;;  %s32_s29 = int_to_ptr.vmem [resolvable:$true] %s31_s29 }
   0x8   :  { %s266_s30 = smov 4  }
   0x9   :  { %37 = dma.hbm_to_vmem [thread:$0]  %s30_s27, 1024, %s32_s29, [#allocation6], %s265_s4, %s265_s4, %s266_s30  }
   0xa   :  { %259 = dma.done.wait [#allocation4], 64  }
   0xb   :  { %260 = vsyncadd [#allocation4], 4294967232 }
   0xc   :  { %261 = dma.done.wait [#allocation6], 1024  }
   0xd   :  { %262 = vsyncadd [#allocation6], 4294966272  ;;  %v199_v1 = vld [vmem:[#allocation5 + $0x38] sm:$0xff]  ;;  %v198_v2 = vld [vmem:[#allocation5 + $0x30] sm:$0xff]  ;;  %vm152_vm0 = vcmask 7168  }
   0xe   :  { %121 = vmatpush.bf16.msra.mxu0 %v199_v1  ;;  %v197_v3 = vld [vmem:[#allocation5 + $0x28] sm:$0xff]  ;;  %v196_v4 = vld [vmem:[#allocation5 + $0x20] sm:$0xff]  ;;  %v195_v5 = vld [vmem:[#allocation5 + $0x18] sm:$0xff] }
   0xf   :  { %v194_v6 = vld [vmem:[#allocation5 + $0x10] sm:$0xff]  ;;  %v193_v7 = vld [vmem:[#allocation5 + $0x8] sm:$0xff]  ;;  %v192_v8 = vld [vmem:[#allocation5] sm:$0xff] }
  0x10   :  { %v52_v9 = vld [vmem:[#allocation3] sm:$0xf]  ;;  %v204_v10 = vld [vmem:[%s317_s2] ss:$0 sm:$0xff] }
  0x11   :  { %v205_v13 = vld [vmem:[%s318_s3] ss:$0 sm:$0xff] }
  0x12   :  { %122 = vmatpush.bf16.msra.mxu0 %v198_v2  ;;  %v206_v17 = vld [vmem:[#allocation2] ss:$0 sm:$0xff] }
  0x16   :  { %123 = vmatpush.bf16.msra.mxu0 %v197_v3 }
  0x1a   :  { %124 = vmatpush.bf16.msra.mxu0 %v196_v4 }
  0x1e   :  { %125 = vmatpush.bf16.msra.mxu0 %v195_v5 }
  0x22   :  { %126 = vmatpush.bf16.msra.mxu0 %v194_v6 }
  0x26   :  { %127 = vmatpush.bf16.msra.mxu0 %v193_v7 }
  0x2a   :  { %128 = vmatpush.bf16.msra.mxu0 %v192_v8 }
  0x2d   :  { %129 = vmatmul.bf16.vlgmr.msra.gmra.mxu0 %v52_v9 }
  0xaa   :  { %v130_v11 = vpop.f32.mrf.mxu0 }
  0xab   :  { %v131_v12 = vadd.f32 %v204_v10, %v130_v11 }
  0xad   :  { %v134_v14 = vmax.f32 %v131_v12, 0.0 }
  0xaf   :  { %v139_v15 = vmul.f32 %v205_v13, %v134_v14 }
  0xb1   :  { %140 = vadd.xlane.f32.xlu0 %v139_v15 }
  0xb2   :  { %v132_v16 = vpop.f32.mrf.mxu0 }
 0x124   :  { %v141_v18 = vpop.xlane.xlu0 %140 }
 0x125   :  { %v146_v19 = vadd.f32 %v206_v17, %v141_v18 }
 0x127   :  { %v147_v20 = vsub.f32 0.0, %v146_v19 }
 0x129   :  { %v148_v21 = vmul.f32 1.442695, %v147_v20 }
 0x12b   :  { %207 = vpow2.f32 %v148_v21 }
 0x131   :  { %v208_v22 = vpop.eup %207 }
 0x132   :  { %v150_v23 = vadd.f32 1.0, %v208_v22 }
 0x134   :  { %209 = vrcp.f32 %v150_v23 }
 0x13a   :  { %v210_v24 = vpop.eup %209 }
 0x13b   :  { %153 = vst.msk [vmem:[%s320_s5] sm:$0xff] %vm152_vm0, %v210_v24 }
 0x13c   :  { %158 = vsyncpa [#allocation4], 1 }
 0x13d   :  { %159 = vsyncpa [#allocation6], 1 }

</bundles_post_ra>
